<compile_context>
chip_gen: v6e
topology: v6e:2x2x1
jax: 0.10.0
libtpu: 0.0.40
codegen_flags: <defaults>
</compile_context>

<pallas_src>
import functools
import numpy as np
import jax
import jax.numpy as jnp
from jax.experimental import pallas as pl
from jax.experimental.pallas import tpu as pltpu


# ----------------------------------------------------------------------------
# Helpers
# ----------------------------------------------------------------------------
def _round_up(v, m):
    return (v + m - 1) // m * m


def _mxu_lane_target():
    """MXU tile width: 128 on v5e, 256 on v6e/v7x (best effort; either is valid)."""
    try:
        kind = jax.devices()[0].device_kind.lower()
    except Exception:
        kind = ""
    return 128 if "v5" in kind else 256


def _pick_group_size(n_muscles, hidden, lane_target):
    """Largest divisor G of n_muscles with G*hidden <= lane_target (>= 1)."""
    best = 1
    for g in range(1, n_muscles + 1):
        if n_muscles % g == 0 and g * hidden <= lane_target:
            best = g
    return best


def _pick_row_tile(rows):
    """Pick (row_tile, rows_pad): minimal padding, >=2 row tiles when feasible."""
    rows_pad8 = _round_up(rows, 8)
    if rows_pad8 <= 256:
        # Small problem: split into (up to) 2 tiles so v7x's 2nd TensorCore has work.
        if rows_pad8 >= 16:
            row_tile = _round_up(rows_pad8 // 2, 8)
        else:
            row_tile = rows_pad8
        return row_tile, _round_up(rows_pad8, row_tile)
    best = None
    for t in (1024, 512, 256):
        padded = _round_up(rows_pad8, t)
        key = (padded - rows_pad8, -t)          # minimize padding, then prefer big tile
        if best is None or key < best[0]:
            best = (key, t, padded)
    return best[1], best[2]


# ----------------------------------------------------------------------------
# Pallas kernel: fused multi-layer dense stack with ReLU, one muscle group + one
# row tile per grid step.   h = x; for j: h = relu(h @ W_j + b_j); out = h
# W_j is the group's (block-diagonal within the group) bf16 dense matrix.
# ----------------------------------------------------------------------------
def _make_mlp_kernel(n_layers):
    def kernel(*refs):
        x_ref = refs[0]
        o_ref = refs[-1]
        h = x_ref[...]                                        # (row_tile, 2G) f32
        for j in range(n_layers):                             # static unrolled layers
            w = refs[1 + 2 * j][...]                          # (Gs_j, Gh_j) bf16
            b = refs[2 + 2 * j][...]                          # (1,    Gh_j) f32
            h = jnp.dot(h.astype(jnp.bfloat16), w,
                        preferred_element_type=jnp.float32) + b
            h = jnp.maximum(h, 0.0)                           # ReLU after every layer
        o_ref[...] = h.astype(o_ref.dtype)
    return kernel


@functools.partial(jax.jit, static_argnames=("n_layers", "group_size"))
def _muscle_mlp(x, params, n_layers, group_size):
    """x: (B, T, 2M) f32 -> (B, T, 2M) f32 via per-muscle MLPs (grouped)."""
    B, T, cin = x.shape
    M = cin // 2
    G = group_size
    assert M % G == 0
    n_groups = M // G
    gcin = 2 * G
    gcout = 2 * G                                   # (F, K) per muscle

    rows = B * T
    row_tile, rows_pad = _pick_row_tile(rows)

    x2d = x.reshape(rows, cin)
    if rows_pad != rows:
        # TODO(synk): for very large ragged B*T, mask the tail in-kernel instead of
        # this HBM pad copy; it never triggers when rows is a multiple of row_tile.
        x2d = jnp.pad(x2d, ((0, rows_pad - rows), (0, 0)))
    # (n_groups, rows_pad, 2G): group axis leading so every block spans the full lane
    # extent of the last dim (keeps the (8,128) block rules trivially satisfied).
    x3 = x2d.reshape(rows_pad, n_groups, gcin).transpose(1, 0, 2)

    in_specs = [pl.BlockSpec((None, row_tile, gcin), lambda g, i: (g, i, 0))]
    for j in range(n_layers):
        wg = params[2 * j]                          # (n_groups, G*s_j, G*h_j) bf16
        bg = params[2 * j + 1]                      # (n_groups, 1,     G*h_j) f32
        in_specs.append(pl.BlockSpec((None,) + wg.shape[1:], lambda g, i: (g, 0, 0)))
        in_specs.append(pl.BlockSpec((None,) + bg.shape[1:], lambda g, i: (g, 0, 0)))

    # Explicit VMEM budget: double-buffered i/o + weights + activation working set.
    wbytes = sum(int(np.prod(params[2 * j].shape[1:])) * 2 +
                 int(np.prod(params[2 * j + 1].shape[1:])) * 4
                 for j in range(n_layers))
    max_width = max(int(params[2 * j].shape[-1]) for j in range(n_layers))
    est = 2 * (wbytes + row_tile * (gcin + gcout) * 4) + 4 * row_tile * max_width * 4
    vmem_limit = int(min(64 * 2**20, max(8 * 2**20, 4 * est)))

    out3 = pl.pallas_call(
        _make_mlp_kernel(n_layers),
        out_shape=jax.ShapeDtypeStruct((n_groups, rows_pad, gcout), jnp.float32),
        grid=(n_groups, rows_pad // row_tile),
        in_specs=in_specs,
        out_specs=pl.BlockSpec((None, row_tile, gcout), lambda g, i: (g, i, 0)),
        compiler_params=pltpu.CompilerParams(
            dimension_semantics=("parallel", "parallel"),
            vmem_limit_bytes=vmem_limit),
    )(x3, *params)

    out2d = out3.transpose(1, 0, 2).reshape(rows_pad, 2 * M)
    return out2d[:rows].reshape(B, T, 2 * M)


def nn_muscle_model_forward(x, states, params, n_layers, group_size):
    """Mirrors NNMuscleModel.forward(x, states) -> (out, None)."""
    # TODO(synk): states[1] is accepted for interface parity but (as in the original
    # broken module) never influences the computation.
    del states
    return _muscle_mlp(x, params, n_layers, group_size), None


# ----------------------------------------------------------------------------
# Parameter construction
#   per-muscle weights w_j: (M, s_j, h_j) (bf16-representable f32), biases (M, h_j) f32
#   kernel layout: per-group block-diagonal stacks
#       Wg_j: (n_groups, G*s_j, G*h_j) bf16,  Bg_j: (n_groups, 1, G*h_j) f32
#   (init scaled by 1/sqrt(fan_in) only so the numerical check stays tight)
# ----------------------------------------------------------------------------
def make_params(key, input_size, hidden_size, n_layers, group_size):
    M = input_size // 2
    G = group_size
    assert M % G == 0
    n_groups = M // G
    sizes_in = [2] + [hidden_size] * (n_layers - 1)
    sizes_out = [hidden_size] * (n_layers - 1) + [2]   # last layer emits (F, K)
    keys = jax.random.split(key, 2 * n_layers)

    per_muscle, dense = [], []
    eye_g = jnp.eye(G, dtype=jnp.float32)
    for j in range(n_layers):
        s, h = sizes_in[j], sizes_out[j]
        w = jax.random.normal(keys[2 * j], (M, s, h), jnp.float32) / np.sqrt(s)
        b = jax.random.normal(keys[2 * j + 1], (M, h), jnp.float32) / np.sqrt(s)
        # Store weights at bf16 precision (MXU-native); the reference uses the same
        # rounded values so the check only sees activation-cast error.
        w = w.astype(jnp.bfloat16).astype(jnp.float32)
        per_muscle.append((w, b))
        # Per-group block-diagonal: Wg[g, m*s+a, m*h+c] = w[g*G+m, a, c]
        wg = w.reshape(n_groups, G, s, h)
        wgd = jnp.einsum('gmac,mn->gmanc', wg, eye_g).reshape(n_groups, G * s, G * h)
        bgd = b.reshape(n_groups, 1, G * h)
        dense.append(wgd.astype(jnp.bfloat16))
        dense.append(bgd)
    return tuple(dense), per_muscle


# ----------------------------------------------------------------------------
# Independent host-side reference (float64 numpy) of the intended forward:
#   per-timestep, per-muscle MLP; out[:, t, :] = per-muscle (F, K), interleaved
# ----------------------------------------------------------------------------
def reference_forward(x, per_muscle, n_layers):
    xn = np.asarray(x, dtype=np.float64)
    B, T, C = xn.shape
    M = C // 2
    h = xn.reshape(B, T, M, 2)
    for j in range(n_layers):
        w = np.asarray(per_muscle[j][0], dtype=np.float64)   # (M, s, hj)
        b = np.asarray(per_muscle[j][1], dtype=np.float64)   # (M, hj)
        h = np.einsum('btms,msh->btmh', h, w) + b
        h = np.maximum(h, 0.0)
    return h.reshape(B, T, M * 2)


if __name__ == "__main__":
    B, T = 2, 16
    input_size = 8            # 4 muscles x 2 activation channels
    hidden_size = 32          # per-muscle hidden width -> one 128-lane group at toy size
    n_layers = 3
    output_size = input_size  # (F, K) per muscle
    num_states = 2

    key = jax.random.PRNGKey(0)
    kx, kp, ks = jax.random.split(key, 3)
    x = jax.random.normal(kx, (B, T, input_size), jnp.float32)

    M = input_size // 2
    G = _pick_group_size(M, hidden_size, _mxu_lane_target())
    params, per_muscle = make_params(kp, input_size, hidden_size, n_layers, G)
    states = (None, jax.random.normal(ks, (B, num_states), jnp.float32))

    out, new_states = nn_muscle_model_forward(x, states, params, n_layers, G)
    out = jax.block_until_ready(out)

    ref = reference_forward(x, per_muscle, n_layers)
    assert out.shape == (B, T, output_size)
    assert new_states is None
    np.testing.assert_allclose(np.asarray(out), ref, rtol=5e-2, atol=5e-2)

    print("KERNEL_OK")
</pallas_src>

<mosaic_0001>
module attributes {stable_mosaic.version = 11 : i64} {
  func.func @kernel(%arg0: i32, %arg1: i32, %arg2: memref<1x16x8xf32, #tpu.memory_space<vmem>>, %arg3: memref<1x8x128xbf16, #tpu.memory_space<vmem>>, %arg4: memref<1x1x128xf32, #tpu.memory_space<vmem>>, %arg5: memref<1x128x128xbf16, #tpu.memory_space<vmem>>, %arg6: memref<1x1x128xf32, #tpu.memory_space<vmem>>, %arg7: memref<1x128x8xbf16, #tpu.memory_space<vmem>>, %arg8: memref<1x1x8xf32, #tpu.memory_space<vmem>>, %arg9: memref<1x16x8xf32, #tpu.memory_space<vmem>>) attributes {dimension_semantics = [#tpu.dimension_semantics<parallel>, #tpu.dimension_semantics<parallel>], iteration_bounds = array<i64: 1, 2>, scalar_prefetch = 0 : i64, scratch_operands = 0 : i64, tpu.core_type = #tpu.core_type<tc>, window_params = [{transform_indices = @transform_0, window_bounds = array<i64: 1, 16, 8>}, {transform_indices = @transform_1, window_bounds = array<i64: 1, 8, 128>}, {transform_indices = @transform_2, window_bounds = array<i64: 1, 1, 128>}, {transform_indices = @transform_3, window_bounds = array<i64: 1, 128, 128>}, {transform_indices = @transform_4, window_bounds = array<i64: 1, 1, 128>}, {transform_indices = @transform_5, window_bounds = array<i64: 1, 128, 8>}, {transform_indices = @transform_6, window_bounds = array<i64: 1, 1, 8>}, {transform_indices = @transform_7, window_bounds = array<i64: 1, 16, 8>}]} {
    %c0 = arith.constant 0 : index
    %c0_0 = arith.constant 0 : index
    %c0_1 = arith.constant 0 : index
    %0 = vector.load %arg2[%c0, %c0_0, %c0_1] : memref<1x16x8xf32, #tpu.memory_space<vmem>>, vector<1x16x8xf32>
    %1 = vector.shape_cast %0 : vector<1x16x8xf32> to vector<16x8xf32>
    %c0_2 = arith.constant 0 : index
    %c0_3 = arith.constant 0 : index
    %c0_4 = arith.constant 0 : index
    %2 = vector.load %arg3[%c0_2, %c0_3, %c0_4] : memref<1x8x128xbf16, #tpu.memory_space<vmem>>, vector<1x8x128xbf16>
    %3 = vector.shape_cast %2 : vector<1x8x128xbf16> to vector<8x128xbf16>
    %c0_5 = arith.constant 0 : index
    %c0_6 = arith.constant 0 : index
    %c0_7 = arith.constant 0 : index
    %4 = vector.load %arg4[%c0_5, %c0_6, %c0_7] : memref<1x1x128xf32, #tpu.memory_space<vmem>>, vector<1x1x128xf32>
    %5 = vector.shape_cast %4 : vector<1x1x128xf32> to vector<1x128xf32>
    %6 = arith.truncf %1 : vector<16x8xf32> to vector<16x8xbf16>
    %cst = arith.constant dense<0.000000e+00> : vector<16x128xf32>
    %7 = tpu.matmul %6, %3, %cst {dimension_numbers = #tpu.dot_dimension_numbers<[1], [0], [0], [1], [0, 0, 1, 1], [], []>} : vector<16x8xbf16>, vector<8x128xbf16>, vector<16x128xf32> -> vector<16x128xf32>
    %8 = vector.broadcast %5 : vector<1x128xf32> to vector<16x128xf32>
    %9 = arith.addf %7, %8 : vector<16x128xf32>
    %cst_8 = arith.constant 0.000000e+00 : f32
    %10 = vector.broadcast %cst_8 : f32 to vector<16x128xf32>
    %11 = arith.maximumf %9, %10 : vector<16x128xf32>
    %c0_9 = arith.constant 0 : index
    %c0_10 = arith.constant 0 : index
    %c0_11 = arith.constant 0 : index
    %12 = vector.load %arg5[%c0_9, %c0_10, %c0_11] : memref<1x128x128xbf16, #tpu.memory_space<vmem>>, vector<1x128x128xbf16>
    %13 = vector.shape_cast %12 : vector<1x128x128xbf16> to vector<128x128xbf16>
    %c0_12 = arith.constant 0 : index
    %c0_13 = arith.constant 0 : index
    %c0_14 = arith.constant 0 : index
    %14 = vector.load %arg6[%c0_12, %c0_13, %c0_14] : memref<1x1x128xf32, #tpu.memory_space<vmem>>, vector<1x1x128xf32>
    %15 = vector.shape_cast %14 : vector<1x1x128xf32> to vector<1x128xf32>
    %16 = arith.truncf %11 : vector<16x128xf32> to vector<16x128xbf16>
    %cst_15 = arith.constant dense<0.000000e+00> : vector<16x128xf32>
    %17 = tpu.matmul %16, %13, %cst_15 {dimension_numbers = #tpu.dot_dimension_numbers<[1], [0], [0], [1], [0, 0, 1, 1], [], []>} : vector<16x128xbf16>, vector<128x128xbf16>, vector<16x128xf32> -> vector<16x128xf32>
    %18 = vector.broadcast %15 : vector<1x128xf32> to vector<16x128xf32>
    %19 = arith.addf %17, %18 : vector<16x128xf32>
    %cst_16 = arith.constant 0.000000e+00 : f32
    %20 = vector.broadcast %cst_16 : f32 to vector<16x128xf32>
    %21 = arith.maximumf %19, %20 : vector<16x128xf32>
    %c0_17 = arith.constant 0 : index
    %c0_18 = arith.constant 0 : index
    %c0_19 = arith.constant 0 : index
    %22 = vector.load %arg7[%c0_17, %c0_18, %c0_19] : memref<1x128x8xbf16, #tpu.memory_space<vmem>>, vector<1x128x8xbf16>
    %23 = vector.shape_cast %22 : vector<1x128x8xbf16> to vector<128x8xbf16>
    %c0_20 = arith.constant 0 : index
    %c0_21 = arith.constant 0 : index
    %c0_22 = arith.constant 0 : index
    %24 = vector.load %arg8[%c0_20, %c0_21, %c0_22] : memref<1x1x8xf32, #tpu.memory_space<vmem>>, vector<1x1x8xf32>
    %25 = vector.shape_cast %24 : vector<1x1x8xf32> to vector<1x8xf32>
    %26 = arith.truncf %21 : vector<16x128xf32> to vector<16x128xbf16>
    %cst_23 = arith.constant dense<0.000000e+00> : vector<16x8xf32>
    %27 = tpu.matmul %26, %23, %cst_23 {dimension_numbers = #tpu.dot_dimension_numbers<[1], [0], [0], [1], [0, 0, 1, 1], [], []>} : vector<16x128xbf16>, vector<128x8xbf16>, vector<16x8xf32> -> vector<16x8xf32>
    %28 = vector.broadcast %25 : vector<1x8xf32> to vector<16x8xf32>
    %29 = arith.addf %27, %28 : vector<16x8xf32>
    %cst_24 = arith.constant 0.000000e+00 : f32
    %30 = vector.broadcast %cst_24 : f32 to vector<16x8xf32>
    %31 = arith.maximumf %29, %30 : vector<16x8xf32>
    %c0_25 = arith.constant 0 : index
    %c0_26 = arith.constant 0 : index
    %c0_27 = arith.constant 0 : index
    %32 = vector.load %arg9[%c0_25, %c0_26, %c0_27] : memref<1x16x8xf32, #tpu.memory_space<vmem>>, vector<1x16x8xf32>
    %33 = vector.shape_cast %32 : vector<1x16x8xf32> to vector<16x8xf32>
    %34 = vector.shape_cast %31 : vector<16x8xf32> to vector<1x16x8xf32>
    tpu.vector_store %arg9[%c0_25, %c0_26, %c0_27], %34 {strides = array<i32>} : memref<1x16x8xf32, #tpu.memory_space<vmem>>, vector<1x16x8xf32>,
    return
  }
  func.func @transform_0(%arg0: i32, %arg1: i32) -> (i32, i32, i32) {
    %c0_i32 = arith.constant 0 : i32
    %c0_i32_0 = arith.constant 0 : i32
    return %arg0, %arg1, %c0_i32 : i32, i32, i32
  }
  func.func @transform_1(%arg0: i32, %arg1: i32) -> (i32, i32, i32) {
    %c0_i32 = arith.constant 0 : i32
    %c0_i32_0 = arith.constant 0 : i32
    %c0_i32_1 = arith.constant 0 : i32
    return %arg0, %c0_i32, %c0_i32_0 : i32, i32, i32
  }
  func.func @transform_2(%arg0: i32, %arg1: i32) -> (i32, i32, i32) {
    %c0_i32 = arith.constant 0 : i32
    %c0_i32_0 = arith.constant 0 : i32
    %c0_i32_1 = arith.constant 0 : i32
    return %arg0, %c0_i32, %c0_i32_0 : i32, i32, i32
  }
  func.func @transform_3(%arg0: i32, %arg1: i32) -> (i32, i32, i32) {
    %c0_i32 = arith.constant 0 : i32
    %c0_i32_0 = arith.constant 0 : i32
    %c0_i32_1 = arith.constant 0 : i32
    return %arg0, %c0_i32, %c0_i32_0 : i32, i32, i32
  }
  func.func @transform_4(%arg0: i32, %arg1: i32) -> (i32, i32, i32) {
    %c0_i32 = arith.constant 0 : i32
    %c0_i32_0 = arith.constant 0 : i32
    %c0_i32_1 = arith.constant 0 : i32
    return %arg0, %c0_i32, %c0_i32_0 : i32, i32, i32
  }
  func.func @transform_5(%arg0: i32, %arg1: i32) -> (i32, i32, i32) {
    %c0_i32 = arith.constant 0 : i32
    %c0_i32_0 = arith.constant 0 : i32
    %c0_i32_1 = arith.constant 0 : i32
    return %arg0, %c0_i32, %c0_i32_0 : i32, i32, i32
  }
  func.func @transform_6(%arg0: i32, %arg1: i32) -> (i32, i32, i32) {
    %c0_i32 = arith.constant 0 : i32
    %c0_i32_0 = arith.constant 0 : i32
    %c0_i32_1 = arith.constant 0 : i32
    return %arg0, %c0_i32, %c0_i32_0 : i32, i32, i32
  }
  func.func @transform_7(%arg0: i32, %arg1: i32) -> (i32, i32, i32) {
    %c0_i32 = arith.constant 0 : i32
    %c0_i32_0 = arith.constant 0 : i32
    return %arg0, %arg1, %c0_i32 : i32, i32, i32
  }
}

</mosaic_0001>

<bundles_post_ra>
// kernel: _muscle_mlp.1
= control target key start
LH: loop header
LB: loop body
LE: loop exit
PB: predicated region body
PF: predicated region fallthrough
CT: control target
= control target key end

     0   :  { %s1091_s24 = smov 0   ;;  %s1093_s25 = smov 0   ;;  %s1217_s0 = inlined_call_operand.vmem [shape: f32[1,32,8], index: 0, kind: input, shape index: {}]   ;;  %s1218_s1 = inlined_call_operand.vmem [shape: bf16[1,8,128], index: 1, kind: input, shape index: {}]   ;;  %s1219_s2 = inlined_call_operand.vmem [shape: f32[1,1,128], index: 2, kind: input, shape index: {}]   ;;  %s1220_s3 = inlined_call_operand.vmem [shape: bf16[1,128,128], index: 3, kind: input, shape index: {}]   ;;  %s1221_s4 = inlined_call_operand.vmem [shape: f32[1,1,128], index: 4, kind: input, shape index: {}]   ;;  %s1222_s5 = inlined_call_operand.vmem [shape: bf16[1,128,8], index: 5, kind: input, shape index: {}]   ;;  %s1223_s6 = inlined_call_operand.vmem [shape: f32[1,1,8], index: 6, kind: input, shape index: {}]   ;;  %s1224_s7 = inlined_call_operand.vmem [shape: f32[1,32,8], index: 7, kind: output, shape index: {}]  }
   0x1   :  { %s1095_s26 = smov 0  }
   0x2 LB: > { %s26_s27 = sadd.s32 1, %s1043_s25  ;;  %p890_p0 = scmp.ge.s32.totalorder %s1047_s26, 1  ;;  %s1047_s26 = sphi %s1095_s26, %s17_s26   ;;  %s1043_s25 = sphi %s1093_s25, %s1226_s25   ;;  %s1039_s24 = sphi %s1091_s24, %s1225_s24  }
   0x3   : > { %p27_p1 = scmp.ge.s32.totalorder %s26_s27, 2  ;;  %p311_p2 = scmp.lt.s32.totalorder %s1047_s26, 3 }
   0x5   : > { %s1228_s27 = smov (%p27_p1, %s26_s27), 0  ;;  %p312_p3 = pnand %p890_p0, %p311_p2 }
   0x6   : > { %s891_s30 = sshll.u32 (!%p312_p3), %s1039_s24, 1 }
   0x7   : > { %315 = sbr.rel (%p312_p3) target bundleno = 627 (0x273), region = 48  ;;  %p377_p4 = scmp.lt.s32.totalorder (!%p312_p3), %s891_s30, 3 }
   0xc   : > { %v420_v0 = vld [vmem:[%s1218_s1] sm:$0xf]  ;;  %vm433_vm0 = vcmask 1043456   ;;  %v1049_v1 = vmov 0.0   ;;  %vm1050_vm1 = vmmov 0   ;;  %v1009_v3 = vld [vmem:[%s1220_s3 + $0x38] sm:$0xff]  }
   0xd   : > { %937 = vmatprep.subr.bf16.mxu0 %v1049_v1  ;;  %v435_v2 = vsel %vm433_vm0, %v420_v0, 0  ;;  %939 = vmatprep.mubr.msk.bf16.mxu0 %vm1050_vm1, %v1049_v1  ;;  %s1230_s30 = smov (!%p377_p4, %s891_s30), 3  ;;  %v1010_v4 = vld [vmem:[%s1220_s3 + $0x30] sm:$0xff]   ;;  %v1011_v5 = vld [vmem:[%s1220_s3 + $0x28] sm:$0xff]   ;;  %vm429_vm2 = vcmask 64512   ;;  %v1012_v9 = vld [vmem:[%s1220_s3 + $0x20] sm:$0xff]  }
   0xe   : > { %938 = vmatpush3.bf16.msra.mxu0 %v435_v2  ;;  %943 = vmatprep.subr.bf16.mxu1 %v1049_v1  ;;  %s892_s12 = sshll.u32 %s1230_s30, 3  ;;  %v1013_v10 = vld [vmem:[%s1220_s3 + $0x18] sm:$0xff]   ;;  %v1014_v11 = vld [vmem:[%s1220_s3 + $0x10] sm:$0xff]   ;;  %v1015_v12 = vld [vmem:[%s1220_s3 + $0x8] sm:$0xff]  }
   0xf   : > { %944 = vmatpush3.bf16.msra.mxu1 %v1009_v3  ;;  %959 = vmatprep.mubr.msk.bf16.mxu1 %vm1050_vm1, %v1049_v1  ;;  %s382_s15 = scalar_lea.vmem %s1217_s0, %s892_s12  ;;  %v1016_v13 = vld [vmem:[%s1220_s3] sm:$0xff]   ;;  %v1017_v14 = vld [vmem:[%s1222_s5 + $0x38] sm:$0xff]   ;;  %v1018_v15 = vld [vmem:[%s1222_s5 + $0x30] sm:$0xff]   ;;  %s415_s16 = scalar_lea.vmem %s1224_s7, %s892_s12 }
  0x10   : > { %945 = vmatprep.subr.bf16.mxu1 %v1049_v1  ;;  %963 = vmatprep.subr.bf16.mxu0 %v1049_v1  ;;  %v418_v6 = vld [vmem:[%s382_s15] sm:$0xff]  ;;  %v419_v7 = vld [vmem:[%s382_s15 + $0x8] sm:$0xff]  ;;  %v1021_v18 = vld [vmem:[%s1222_s5 + $0x18] sm:$0xff]  }
  0x11   : > { %v422_v8 = vpack.c.bf16 %v419_v7, %v418_v6  ;;  %v1019_v16 = vld [vmem:[%s1222_s5 + $0x28] sm:$0xff]   ;;  %v1020_v17 = vld [vmem:[%s1222_s5 + $0x20] sm:$0xff]   ;;  %v1022_v29 = vld [vmem:[%s1222_s5 + $0x10] sm:$0xff]  }
  0x12   : > { %v895_v19 = vld [vmem:[%s1219_s2] ss:$0 sm:$0xff]  ;;  %v1023_v30 = vld [vmem:[%s1222_s5 + $0x8] sm:$0xff]  }
  0x13   : > { %946 = vmatpush3.bf16.msra.mxu1 %v1010_v4  ;;  %940 = vmatmul.mubr.msk.bf16.vlgmr.msra.gmra.mxu0 %vm429_vm2, %v422_v8  ;;  %v1024_v31 = vld [vmem:[%s1222_s5] sm:$0xff]  }
  0x14   : > { %947 = vmatprep.subr.bf16.mxu1 %v1049_v1  ;;  %979 = vmatprep.mubr.msk.bf16.mxu0 %vm1050_vm1, %v1049_v1  ;;  %v897_v32 = vld [vmem:[%s1221_s4] ss:$0 sm:$0xff] }
  0x15   : > { %964 = vmatpush3.bf16.msra.mxu0 %v1017_v14  ;;  %v906_v42 = vld [vmem:[%s1223_s6] ss:$0 sm:$0xff] }
  0x16   : > { %965 = vmatprep.subr.bf16.mxu0 %v1049_v1 }
  0x17   : > { %948 = vmatpush3.bf16.msra.mxu1 %v1011_v5 }
  0x18   : > { %949 = vmatprep.subr.bf16.mxu1 %v1049_v1 }
  0x19   : > { %966 = vmatpush3.bf16.msra.mxu0 %v1018_v15 }
  0x1a   : > { %967 = vmatprep.subr.bf16.mxu0 %v1049_v1 }
  0x1b   : > { %950 = vmatpush3.bf16.msra.mxu1 %v1012_v9 }
  0x1c   : > { %951 = vmatprep.subr.bf16.mxu1 %v1049_v1 }
  0x1d   : > { %968 = vmatpush3.bf16.msra.mxu0 %v1019_v16 }
  0x1e   : > { %969 = vmatprep.subr.bf16.mxu0 %v1049_v1 }
  0x1f   : > { %952 = vmatpush3.bf16.msra.mxu1 %v1013_v10 }
  0x20   : > { %953 = vmatprep.subr.bf16.mxu1 %v1049_v1 }
  0x21   : > { %970 = vmatpush3.bf16.msra.mxu0 %v1020_v17 }
  0x22   : > { %971 = vmatprep.subr.bf16.mxu0 %v1049_v1 }
  0x23   : > { %954 = vmatpush3.bf16.msra.mxu1 %v1014_v11 }
  0x24   : > { %955 = vmatprep.subr.bf16.mxu1 %v1049_v1 }
  0x25   : > { %972 = vmatpush3.bf16.msra.mxu0 %v1021_v18 }
  0x26   : > { %973 = vmatprep.subr.bf16.mxu0 %v1049_v1 }
  0x27   : > { %956 = vmatpush3.bf16.msra.mxu1 %v1015_v12 }
  0x28   : > { %957 = vmatprep.subr.bf16.mxu1 %v1049_v1 }
  0x29   : > { %974 = vmatpush3.bf16.msra.mxu0 %v1022_v29 }
  0x2a   : > { %975 = vmatprep.subr.bf16.mxu0 %v1049_v1 }
  0x2b   : > { %958 = vmatpush3.bf16.msra.mxu1 %v1016_v13 }
  0x2d   : > { %976 = vmatpush3.bf16.msra.mxu0 %v1023_v30 }
  0x2e   : > { %977 = vmatprep.subr.bf16.mxu0 %v1049_v1 }
  0x31   : > { %978 = vmatpush3.bf16.msra.mxu0 %v1024_v31 }
  0xd3   : > { %v471_v20 = vpop.f32.mrf.mxu0 }
  0xd4   : > { %v472_v22 = vadd.f32 %v895_v19, %v471_v20 }
  0xd5   : > { %v941_v21 = vpop.f32.mrf.mxu0 }
  0xd6   : > { %v478_v26 = vmax.f32 %v472_v22, 0.0 }
  0xd7   : > { %v474_v23 = vpop.f32.mrf.mxu0 }
  0xd8   : > { %v475_v24 = vadd.f32 %v895_v19, %v474_v23 }
  0xd9   : > { %v942_v25 = vpop.f32.mrf.mxu0 }
  0xda   : > { %v479_v27 = vmax.f32 %v475_v24, 0.0 }
  0xdc   : > { %v497_v28 = vpack.c.bf16 %v479_v27, %v478_v26 }
  0xde   : > { %960 = vmatmul.mubr.bf16.vlgmr.msra.gmra.mxu1 %v497_v28 }
 0x19e   : > { %v586_v33 = vpop.f32.mrf.mxu1 }
 0x19f   : > { %v587_v35 = vadd.f32 %v897_v32, %v586_v33 }
 0x1a0   : > { %v961_v34 = vpop.f32.mrf.mxu1 }
 0x1a1   : > { %v593_v39 = vmax.f32 %v587_v35, 0.0 }
 0x1a2   : > { %v589_v36 = vpop.f32.mrf.mxu1 }
 0x1a3   : > { %v590_v37 = vadd.f32 %v897_v32, %v589_v36 }
 0x1a4   : > { %v962_v38 = vpop.f32.mrf.mxu1 }
 0x1a5   : > { %v594_v40 = vmax.f32 %v590_v37, 0.0 }
 0x1a7   : > { %v612_v41 = vpack.c.bf16 %v594_v40, %v593_v39 }
 0x1a9   : > { %980 = vmatmul.mubr.bf16.vlgmr.msra.gmra.mxu0 %v612_v41 }
 0x269   : > { %v701_v43 = vpop.f32.mrf.mxu0 }
 0x26a   : > { %v702_v44 = vadd.f32 %v906_v42, %v701_v43 }
 0x26b   : > { %v981_v45 = vpop.f32.mrf.mxu0 }
 0x26c   : > { %v708_v46 = vmax.f32 %v702_v44, 0.0 }
 0x26d   : > { %v704_v47 = vpop.f32.mrf.mxu0 }
 0x26e   : > { %710 = vst.msk [vmem:[%s415_s16] sm:$0xff] %vm429_vm2, %v708_v46  ;;  %v705_v48 = vadd.f32 %v906_v42, %v704_v47 }
 0x26f   : > { %v982_v49 = vpop.f32.mrf.mxu0 }
 0x270   : > { %v709_v50 = vmax.f32 %v705_v48, 0.0 }
 0x272   : > { %711 = vst.msk [vmem:[%s415_s16 + $0x8] sm:$0xff] %vm429_vm2, %v709_v50 }
 0x273 PF: > { %s17_s26 = sadd.s32 1, %s1047_s26   ;;  %s1225_s24 = smov %s1043_s25 }
 0x274   : > { %p14_p5 = scmp.ge.s32.totalorder %s17_s26, 4   ;;  %s1226_s25 = smov %s1228_s27 }
 0x276   :  { %16 = sbr.rel (!%p14_p5) target bundleno = 2 (0x2), region = 96 }

</bundles_post_ra>
